<compile_context>
chip_gen: v7x
topology: tpu7x:2x2x1
jax: 0.10.0
libtpu: 0.0.40
codegen_flags: <defaults>
</compile_context>

<pallas_src>
import jax
import jax.numpy as jnp
from jax.experimental import pallas as pl
from jax.experimental.pallas import tpu as pltpu

D_IN, D_H, D_OUT = 21, 50, 10
EPS = 1e-12          # torch.nn.functional.normalize default eps
MAX_BT = 4096        # rows per grid step (cap); multiple of 8


def _mlp_kernel(x_ref, w_ref, b_ref, o_ref):
    # x_ref: (Bt, 21)  w_ref: (21, 10)  b_ref: (1, 10)  o_ref: (Bt, 10)
    h = jnp.dot(x_ref[...], w_ref[...],
                preferred_element_type=jnp.float32) + b_ref[...]
    # F.normalize(h, p=2, dim=1) == h / max(||h||_2, eps)
    #                            == h * rsqrt(max(||h||^2, eps^2))
    sq = jnp.sum(h * h, axis=-1, keepdims=True)           # (Bt, 1)
    inv = jax.lax.rsqrt(jnp.maximum(sq, EPS * EPS))       # EUP slot, ~free
    o_ref[...] = (h * inv).astype(o_ref.dtype)


def _round_up(n, m):
    return ((n + m - 1) // m) * m


def fold_params(params):
    """Collapse fc1..fc4 (no nonlinearity between them) into one affine map.

    Call once per parameter update, NOT inside the per-batch forward.
    """
    (w1, b1), (w2, b2), (w3, b3), (w4, b4) = params
    w = w1 @ w2 @ w3 @ w4                                  # (21, 10)
    b = (((b1 @ w2) + b2) @ w3 + b3) @ w4 + b4             # (10,)
    return w, b.reshape(1, D_OUT)


@jax.jit
def mlp_forward(x, w, b):
    """x: [B, 21] f32, w: [21, 10], b: [1, 10]  ->  [B, 10] (L2-normalized rows)."""
    B = x.shape[0]
    # As large a tile as possible (amortize ~0.35us/step overhead), but at least 2 grid
    # steps when B > 8 so both v7x TensorCores get batch tiles.  Always a multiple of 8.
    Bt = min(MAX_BT, max(8, _round_up(pl.cdiv(B, 2), 8)))
    grid = (pl.cdiv(B, Bt),)     # edge block clipped by Pallas; no pad/slice HBM passes

    return pl.pallas_call(
        _mlp_kernel,
        out_shape=jax.ShapeDtypeStruct((B, D_OUT), jnp.float32),
        grid=grid,
        in_specs=[
            # Streamed batch tiles; last dim equals the full array dim (21) -> legal.
            pl.BlockSpec((Bt, D_IN), lambda i: (i, 0)),
            # Constant index_map: weight / bias stay VMEM-resident across grid steps.
            pl.BlockSpec((D_IN, D_OUT), lambda i: (0, 0)),
            pl.BlockSpec((1, D_OUT), lambda i: (0, 0)),
        ],
        out_specs=pl.BlockSpec((Bt, D_OUT), lambda i: (i, 0)),
        compiler_params=pltpu.CompilerParams(
            dimension_semantics=("parallel",),         # megacore batch sharding (v7x)
            vmem_limit_bytes=32 * 1024 * 1024,         # explicit headroom (v5e default 16 MiB)
        ),
        cost_estimate=pl.CostEstimate(
            flops=2 * B * D_IN * D_OUT + 4 * B * D_OUT,
            transcendentals=B,                          # one rsqrt per row
            bytes_accessed=4 * (B * D_IN + D_IN * D_OUT + D_OUT + B * D_OUT),
        ),
    )(x, w, b)


def init_params(key):
    """Deterministic init mirroring nn.Linear shapes (stored as [in, out])."""
    dims = [(D_IN, D_H), (D_H, D_H), (D_H, D_H), (D_H, D_OUT)]
    params = []
    for fan_in, fan_out in dims:
        key, kw, kb = jax.random.split(key, 3)
        bound = 1.0 / jnp.sqrt(fan_in)
        wgt = jax.random.uniform(kw, (fan_in, fan_out), jnp.float32, -bound, bound)
        bia = jax.random.uniform(kb, (fan_out,), jnp.float32, -bound, bound)
        params.append((wgt, bia))
    return params


if __name__ == "__main__":
    key = jax.random.PRNGKey(0)
    key, kx = jax.random.split(key)
    x = jax.random.normal(kx, (4, 21), dtype=jnp.float32)

    params = init_params(key)
    w, b = fold_params(params)        # once, off the hot path

    out = mlp_forward(x, w, b)
    out = jax.block_until_ready(out)

    # Sanity check against plain-JAX layer-by-layer reference (validates the fold too).
    h = x
    for (wi, bi) in params:
        h = h @ wi + bi
    ref = h / jnp.maximum(jnp.linalg.norm(h, axis=1, keepdims=True), EPS)
    assert out.shape == (4, 10)
    assert jnp.allclose(out, ref, atol=1e-5, rtol=1e-5), \
        float(jnp.max(jnp.abs(out - ref)))

    print("KERNEL_OK")
</pallas_src>

<mosaic_0001>
module attributes {stable_mosaic.version = 11 : i64} {
  func.func @_mlp_kernel(%arg0: i32, %arg1: memref<8x21xf32, #tpu.memory_space<vmem>>, %arg2: memref<21x10xf32, #tpu.memory_space<vmem>>, %arg3: memref<1x10xf32, #tpu.memory_space<vmem>>, %arg4: memref<8x10xf32, #tpu.memory_space<vmem>>) attributes {dimension_semantics = [#tpu.dimension_semantics<parallel>], iteration_bounds = array<i64: 1>, scalar_prefetch = 0 : i64, scratch_operands = 0 : i64, tpu.core_type = #tpu.core_type<tc>, window_params = [{transform_indices = @transform_0, window_bounds = array<i64: 8, 21>}, {pipeline_mode = #tpu.pipeline_mode<synchronous>, transform_indices = @transform_1, window_bounds = array<i64: 21, 10>}, {pipeline_mode = #tpu.pipeline_mode<synchronous>, transform_indices = @transform_2, window_bounds = array<i64: 1, 10>}, {transform_indices = @transform_3, window_bounds = array<i64: 8, 10>}]} {
    %c0 = arith.constant 0 : index
    %c0_0 = arith.constant 0 : index
    %0 = vector.load %arg1[%c0, %c0_0] : memref<8x21xf32, #tpu.memory_space<vmem>>, vector<8x21xf32>
    %c0_1 = arith.constant 0 : index
    %c0_2 = arith.constant 0 : index
    %1 = vector.load %arg2[%c0_1, %c0_2] : memref<21x10xf32, #tpu.memory_space<vmem>>, vector<21x10xf32>
    %cst = arith.constant dense<0.000000e+00> : vector<8x10xf32>
    %2 = tpu.matmul %0, %1, %cst {dimension_numbers = #tpu.dot_dimension_numbers<[1], [0], [0], [1], [0, 0, 1, 1], [], []>} : vector<8x21xf32>, vector<21x10xf32>, vector<8x10xf32> -> vector<8x10xf32>
    %c0_3 = arith.constant 0 : index
    %c0_4 = arith.constant 0 : index
    %3 = vector.load %arg3[%c0_3, %c0_4] : memref<1x10xf32, #tpu.memory_space<vmem>>, vector<1x10xf32>
    %4 = vector.broadcast %3 : vector<1x10xf32> to vector<8x10xf32>
    %5 = arith.addf %2, %4 : vector<8x10xf32>
    %6 = arith.mulf %5, %5 : vector<8x10xf32>
    %cst_5 = arith.constant dense<0.000000e+00> : vector<8xf32>
    %7 = vector.multi_reduction <add>, %6, %cst_5 [1] : vector<8x10xf32> to vector<8xf32>
    %8 = vector.shape_cast %7 : vector<8xf32> to vector<8x1xf32>
    %cst_6 = arith.constant 1.000000e-24 : f32
    %9 = vector.broadcast %cst_6 : f32 to vector<8x1xf32>
    %10 = arith.maximumf %8, %9 : vector<8x1xf32>
    %11 = math.rsqrt %10 : vector<8x1xf32>
    %12 = vector.broadcast %11 : vector<8x1xf32> to vector<8x10xf32>
    %13 = arith.mulf %5, %12 : vector<8x10xf32>
    %c0_7 = arith.constant 0 : index
    %c0_8 = arith.constant 0 : index
    %14 = vector.load %arg4[%c0_7, %c0_8] : memref<8x10xf32, #tpu.memory_space<vmem>>, vector<8x10xf32>
    tpu.vector_store %arg4[%c0_7, %c0_8], %13 {strides = array<i32>} : memref<8x10xf32, #tpu.memory_space<vmem>>, vector<8x10xf32>,
    return
  }
  func.func @transform_0(%arg0: i32) -> (i32, i32) {
    %c0_i32 = arith.constant 0 : i32
    %c0_i32_0 = arith.constant 0 : i32
    return %arg0, %c0_i32 : i32, i32
  }
  func.func @transform_1(%arg0: i32) -> (i32, i32) {
    %c0_i32 = arith.constant 0 : i32
    %c0_i32_0 = arith.constant 0 : i32
    %c0_i32_1 = arith.constant 0 : i32
    return %c0_i32, %c0_i32_0 : i32, i32
  }
  func.func @transform_2(%arg0: i32) -> (i32, i32) {
    %c0_i32 = arith.constant 0 : i32
    %c0_i32_0 = arith.constant 0 : i32
    %c0_i32_1 = arith.constant 0 : i32
    return %c0_i32, %c0_i32_0 : i32, i32
  }
  func.func @transform_3(%arg0: i32) -> (i32, i32) {
    %c0_i32 = arith.constant 0 : i32
    %c0_i32_0 = arith.constant 0 : i32
    return %arg0, %c0_i32 : i32, i32
  }
}

</mosaic_0001>

<bundles_post_ra>
// kernel: mlp_forward.1
= control target key start
LH: loop header
LB: loop body
LE: loop exit
PB: predicated region body
PF: predicated region fallthrough
CT: control target
= control target key end

     0   :  { %8 = vsyncpa [#allocation3], 0  ;;  %v180_v2 = vmov 0.0|0.0   ;;  %vm181_vm0 = vmmov 0   ;;  %v182_v4 = vmov 0.0   ;;  %vm30_vm1 = vcmask 1044480   ;;  %s233_s0 = inlined_call_operand.vmem [shape: f32[4,21], index: 0, kind: input, shape index: {}]   ;;  %s234_s1 = inlined_call_operand.vmem [shape: f32[21,10], index: 1, kind: input, shape index: {}]   ;;  %s235_s2 = inlined_call_operand.vmem [shape: f32[1,10], index: 2, kind: input, shape index: {}]   ;;  %s236_s3 = inlined_call_operand.hbm [shape: f32[4,10], index: 3, kind: output, shape index: {}]  }
   0x1   :  { %v16_v0 = vld [vmem:[%s234_s1] sm:$0xff]  ;;  %v17_v1 = vld [vmem:[%s234_s1 + $0x8] sm:$0xff]  ;;  %145 = vmatprep.subr.bf16.mxu0 %v180_v2  ;;  %142 = vmatprep.mubr.msk.f32.mxu0 %vm181_vm0, %v182_v4  ;;  %v18_v5 = vld [vmem:[%s234_s1 + $0x10] sm:$0x1f]  ;;  %vm26_vm2 = vcmask 171008   ;;  %vm105_vm3 = vcmask 80896  }
   0x2   :  { %v146_v3 = vpack.c.bf16 %v17_v1, %v16_v0  ;;  %v15_v6 = vld [vmem:[%s233_s0] sm:$0xff] }
   0x3   :  { %v129_v7 = vld [vmem:[%s235_s2] ss:$0 sm:$0xff] }
   0x4   :  { %147 = vmatpush3.bf16.msra.mxu0 %v146_v3 }
   0x5   :  { %140 = vmatprep.subr.mxu0 %v182_v4 }
   0x8   :  { %141 = vmatpush3.msk.msra.mxu0 %vm30_vm1, %v18_v5 }
   0x9   :  { %143 = vmatmul.mubr.msk.f32.vlgmr.msra.gmra.mrb[0].mxu0 %vm26_vm2, %v15_v6 }
  0xdc   :  { %v100_v8 = vpop.f32.mrb[0].mxu0 }
  0xdd   :  { %v101_v9 = vadd.f32 %v129_v7, %v100_v8  ;;  %v144_v10 = vpop.f32.mrb[1].mxu0 }
  0xdf   :  { %v104_v11 = vmul.f32 %v101_v9, %v101_v9 }
  0xe1   :  { %v106_v12 = vsel %vm105_vm3, %v104_v11, 0.0 }
  0xe2   :  { %107 = vadd.xlane.f32.xlu0 %v106_v12 }
 0x16f   :  { %v108_v13 = vpop.xlane.xlu0 %107 }
 0x170   :  { %v109_v14 = vmax.f32 %v108_v13, 1e-24 }
 0x172   :  { %154 = vrsqrt.f32 %v109_v14 }
 0x17c   :  { %v155_v15 = vpop.eup %154 }
 0x17d   :  { %v111_v16 = vmul.f32 %v155_v15, %v101_v9 }
 0x17f   :  { %112 = vst.msk [vmem:[#allocation2] sm:$0xff] %vm105_vm3, %v111_v16 }
 0x180   :  { %117 = vsyncadd [#allocation3], 64  ;;  %s183_s0 = smov [#allocation2]  }
 0x181   :  { %s118_s1 = sshll.u32 %s183_s0, 4  ;;  %s119_s1 = int_to_ptr.vmem [resolvable:$true] %s118_s1 }
 0x182   :  { %s156_s22 = scalar_lea.vmem %s119_s1, 64  ;;  %s160_s2 = scalar_lea.vmem %s119_s1, 128 }
 0x183   :  { %p157_p0 = scmp.ne.s32.totalorder %s119_s1, %s156_s22  ;;  %p161_p1 = scmp.lt.s32.totalorder %s119_s1, %s119_s1 }
 0x184   :  { %p162_p2 = scmp.lt.s32.totalorder %s160_s2, %s156_s22 }
 0x186   :  { %p163_p3 = por %p162_p2, %p161_p1 }
 0x188   :  { %p164_p4 = pnand %p163_p3, %p157_p0 }
 0x18a   :  { %167 = shalt.err (!%p164_p4)
}
 0x18b   :  { %s168_s25 = scalar_lea.hbm %s236_s3, 64 }
 0x18c   :  { %p169_p5 = scmp.ne.s32.totalorder %s236_s3, %s168_s25  ;;  %p172_p6 = scmp.lt.u32.totalorder %s168_s25, %s236_s3 }
 0x18e   :  { %p174_p7 = pnand %p172_p6, %p169_p5 }
 0x190   :  { %177 = shalt.err (!%p174_p7)
}
 0x191   :  { %s184_s30 = smov 64   ;;  %s185_s4 = smov 4  }
 0x192   :  { %124 = dma.vmem_to_hbm [thread:$0]  %s119_s1, 64, %s236_s3, [#allocation3], %s184_s30, %s184_s30, %s185_s4  }
 0x193   :  { %178 = dma.done.wait [#allocation3], 128  }
 0x194   :  { %179 = vsyncadd [#allocation3], 4294967168 }
 0x195   :  { %128 = vsyncpa [#allocation3], 1 }

</bundles_post_ra>
